<compile_context>
chip_gen: v5e
topology: v5e:2x2
jax: 0.10.0
libtpu: 0.0.40
codegen_flags: <defaults>
</compile_context>

<pallas_src>
import jax
import jax.numpy as jnp
from jax.experimental import pallas as pl
from jax.experimental.pallas import tpu as pltpu


# ----------------------------- Pallas kernel ------------------------------ #

def _decoder_kernel(x_ref, w_in_ref, b_in_ref, w_h_ref, b_h_ref,
                    w_musig_ref, b_musig_ref, beta_ref, eps_ref,
                    packed_ref, word_dist_ref):
    f32 = jnp.float32
    bf16 = jnp.bfloat16

    def mm(a, w):
        # MXU matmul: bf16 operands, f32 accumulation.
        return jnp.dot(a.astype(bf16), w, preferred_element_type=f32)

    def softplus(v):
        # matches torch.nn.Softplus (numerically stable log(1+exp(v)))
        return jnp.logaddexp(v, 0.0)

    def batchnorm(v):
        # BatchNorm1d(affine=False), training mode: batch mean, biased batch var.
        # Centered tensor computed once and reused for var + normalize.
        mean = jnp.mean(v, axis=0, keepdims=True)
        c = v - mean
        var = jnp.mean(c * c, axis=0, keepdims=True)
        return c * jax.lax.rsqrt(var + 1e-5)

    def softmax_rows(v):
        m = jnp.max(v, axis=1, keepdims=True)
        e = jnp.exp(v - m)
        inv = pl.reciprocal(jnp.sum(e, axis=1, keepdims=True), approx=True)
        return e * inv

    k = eps_ref.shape[1]
    x = x_ref[...]

    # --- InferenceNetwork ---
    h = softplus(mm(x, w_in_ref[...]) + b_in_ref[...])
    h = softplus(mm(h, w_h_ref[...]) + b_h_ref[...])
    # dropout_enc: identity (eval)

    # fused mu / log_sigma projection + fused per-feature BatchNorm
    musig = batchnorm(mm(h, w_musig_ref[...]) + b_musig_ref[...])
    mu = musig[:, :k]
    log_sigma = musig[:, k:]
    posterior_sigma = jnp.exp(log_sigma)

    # --- reparameterize + theta ---
    z = mu + eps_ref[...] * jnp.exp(0.5 * log_sigma)
    theta = softmax_rows(z)
    # drop_theta: identity (eval)

    # --- prodLDA word distribution ---
    word_dist = softmax_rows(batchnorm(mm(theta, beta_ref[...])))

    # packed output layout: [ mu | log_sigma | sigma | theta ]  -> [N, 4K]
    packed_ref[...] = jnp.concatenate([musig, posterior_sigma, theta], axis=1)
    word_dist_ref[...] = word_dist


# ------------------------------- wrapper ----------------------------------- #

def decoder_network_forward(x, params, eps):
    """Runs the whole DecoderNetwork hot path in one Pallas call (all in VMEM)."""
    n, v = x.shape
    k = eps.shape[1]
    h0 = params["w_in"].shape[1]
    h1 = params["w_h"].shape[1]

    inputs = (
        x,
        params["w_in"], params["b_in"],
        params["w_h"], params["b_h"],
        params["w_musig"], params["b_musig"],
        params["beta"], eps,
    )

    out_shape = (
        jax.ShapeDtypeStruct((n, 4 * k), jnp.float32),   # [mu | log_sigma | sigma | theta]
        jax.ShapeDtypeStruct((n, v), jnp.float32),       # word_dist
    )

    # explicit VMEM budget (everything is resident; no grid => no double-buffering)
    in_bytes = sum(int(a.size) * a.dtype.itemsize for a in inputs)
    out_bytes = n * 4 * k * 4 + n * v * 4
    vmem_limit = int(min(max(2 * (in_bytes + out_bytes) + (2 << 20), 8 << 20), 64 << 20))

    flops = 2 * n * (v * h0 + h0 * h1 + h1 * 2 * k + k * v)
    transcendentals = n * (2 * (h0 + h1) + 6 * k + 2 * v + 2)   # rough, advisory only
    cost = pl.CostEstimate(flops=flops, transcendentals=transcendentals,
                           bytes_accessed=in_bytes + out_bytes)

    vmem = pl.BlockSpec(memory_space=pltpu.MemorySpace.VMEM)
    packed, word_dist = pl.pallas_call(
        _decoder_kernel,
        out_shape=out_shape,
        in_specs=[vmem] * len(inputs),
        out_specs=(vmem, vmem),
        compiler_params=pltpu.CompilerParams(vmem_limit_bytes=vmem_limit),
        cost_estimate=cost,
    )(*inputs)

    mu = packed[:, 0 * k:1 * k]
    log_sigma = packed[:, 1 * k:2 * k]
    sigma = packed[:, 2 * k:3 * k]
    theta = packed[:, 3 * k:4 * k]

    return (params["prior_mean"], params["prior_variance"],
            mu, sigma, log_sigma, word_dist, theta)


# --------------------------- deterministic init ----------------------------- #

def init_params(key, input_size, n_components, hidden_sizes):
    h0, h1 = hidden_sizes
    ks = jax.random.split(key, 9)

    def linear(kw, kb, fan_in, fan_out):
        bound = 1.0 / jnp.sqrt(fan_in)
        # stored as [in, out] so the kernel does x @ W
        w = jax.random.uniform(kw, (fan_in, fan_out), jnp.float32, -bound, bound)
        b = jax.random.uniform(kb, (1, fan_out), jnp.float32, -bound, bound)
        return w, b

    w_in, b_in = linear(ks[0], ks[1], input_size, h0)
    w_h, b_h = linear(ks[2], ks[3], h0, h1)
    w_mu, b_mu = linear(ks[4], ks[5], h1, n_components)
    w_sig, b_sig = linear(ks[6], ks[7], h1, n_components)

    # fused mu || sigma projection: one [h1, 2K] matmul instead of two [h1, K]
    w_musig = jnp.concatenate([w_mu, w_sig], axis=1)
    b_musig = jnp.concatenate([b_mu, b_sig], axis=1)

    # xavier_uniform_ for beta: bound = sqrt(6 / (K + V))
    xb = jnp.sqrt(6.0 / (n_components + input_size))
    beta = jax.random.uniform(ks[8], (n_components, input_size), jnp.float32, -xb, xb)

    bf16 = jnp.bfloat16
    return {
        # MXU operands stored in bf16 (halves weight DMA); biases stay f32
        "w_in": w_in.astype(bf16), "b_in": b_in,
        "w_h": w_h.astype(bf16), "b_h": b_h,
        "w_musig": w_musig.astype(bf16), "b_musig": b_musig,
        "beta": beta.astype(bf16),
        "prior_mean": jnp.zeros((n_components,), jnp.float32),
        "prior_variance": jnp.full((n_components,),
                                   1.0 - 1.0 / n_components, jnp.float32),
    }


# ------------------------------ reference ---------------------------------- #

def _reference(x, p, eps):
    """Plain-JAX reference with the same bf16-at-MXU-boundary numerics."""
    bf16 = jnp.bfloat16
    mm = lambda a, w: jnp.dot(a.astype(bf16), w.astype(bf16),
                              preferred_element_type=jnp.float32)
    softplus = lambda v: jnp.logaddexp(v, 0.0)

    def bn(v):
        mean = v.mean(0, keepdims=True)
        c = v - mean
        return c * jax.lax.rsqrt((c * c).mean(0, keepdims=True) + 1e-5)

    k = eps.shape[1]
    h = softplus(mm(x, p["w_in"]) + p["b_in"])
    h = softplus(mm(h, p["w_h"]) + p["b_h"])
    musig = bn(mm(h, p["w_musig"]) + p["b_musig"])
    mu, ls = musig[:, :k], musig[:, k:]
    theta = jax.nn.softmax(mu + eps * jnp.exp(0.5 * ls), axis=1)
    wd = jax.nn.softmax(bn(mm(theta, p["beta"])), axis=1)
    return mu, jnp.exp(ls), ls, wd, theta


# --------------------------------- main ------------------------------------ #

if __name__ == "__main__":
    N, V, K = 8, 256, 16            # batch, vocab (input_size), n_components
    HIDDEN = (128, 128)             # lane-dense hidden widths (multiples of 128)

    root = jax.random.PRNGKey(0)
    k_param, k_x, k_eps = jax.random.split(root, 3)

    params = init_params(k_param, V, K, HIDDEN)
    x = jax.random.uniform(k_x, (N, V), jnp.float32, 0.0, 5.0)   # BoW-ish counts
    eps = jax.random.normal(k_eps, (N, K), jnp.float32)          # reparam noise

    outs = jax.block_until_ready(decoder_network_forward(x, params, eps))

    # correctness check against a plain-JAX reference with identical mixed
    # precision; tolerance absorbs the approx-reciprocal softmax (~2^-12 rel).
    ref = _reference(x, params, eps)
    got = outs[2:]  # (mu, sigma, log_sigma, word_dist, theta)
    for g, r in zip(got, ref):
        assert g.shape == r.shape
        assert jnp.allclose(g, r, atol=2e-3, rtol=2e-3), "mismatch vs reference"

    print("KERNEL_OK")
</pallas_src>

<mosaic_0001>
module attributes {stable_mosaic.version = 11 : i64} {
  func.func @_decoder_kernel(%arg0: memref<8x256xf32, #tpu.memory_space<vmem>>, %arg1: memref<256x128xbf16, #tpu.memory_space<vmem>>, %arg2: memref<1x128xf32, #tpu.memory_space<vmem>>, %arg3: memref<128x128xbf16, #tpu.memory_space<vmem>>, %arg4: memref<1x128xf32, #tpu.memory_space<vmem>>, %arg5: memref<128x32xbf16, #tpu.memory_space<vmem>>, %arg6: memref<1x32xf32, #tpu.memory_space<vmem>>, %arg7: memref<16x256xbf16, #tpu.memory_space<vmem>>, %arg8: memref<8x16xf32, #tpu.memory_space<vmem>>, %arg9: memref<8x64xf32, #tpu.memory_space<vmem>>, %arg10: memref<8x256xf32, #tpu.memory_space<vmem>>) attributes {dimension_semantics = [], scalar_prefetch = 0 : i64, scratch_operands = 0 : i64, tpu.core_type = #tpu.core_type<tc>} {
    %c0 = arith.constant 0 : index
    %c0_0 = arith.constant 0 : index
    %0 = vector.load %arg0[%c0, %c0_0] : memref<8x256xf32, #tpu.memory_space<vmem>>, vector<8x256xf32>
    %c0_1 = arith.constant 0 : index
    %c0_2 = arith.constant 0 : index
    %1 = vector.load %arg1[%c0_1, %c0_2] : memref<256x128xbf16, #tpu.memory_space<vmem>>, vector<256x128xbf16>
    %2 = arith.truncf %0 : vector<8x256xf32> to vector<8x256xbf16>
    %cst = arith.constant dense<0.000000e+00> : vector<8x128xf32>
    %3 = tpu.matmul %2, %1, %cst {dimension_numbers = #tpu.dot_dimension_numbers<[1], [0], [0], [1], [0, 0, 1, 1], [], []>} : vector<8x256xbf16>, vector<256x128xbf16>, vector<8x128xf32> -> vector<8x128xf32>
    %c0_3 = arith.constant 0 : index
    %c0_4 = arith.constant 0 : index
    %4 = vector.load %arg2[%c0_3, %c0_4] : memref<1x128xf32, #tpu.memory_space<vmem>>, vector<1x128xf32>
    %5 = vector.broadcast %4 : vector<1x128xf32> to vector<8x128xf32>
    %6 = arith.addf %3, %5 : vector<8x128xf32>
    %cst_5 = arith.constant 0.000000e+00 : f32
    %7 = vector.broadcast %cst_5 : f32 to vector<8x128xf32>
    %8 = arith.maximumf %6, %7 : vector<8x128xf32>
    %9 = vector.broadcast %cst_5 : f32 to vector<8x128xf32>
    %10 = arith.subf %6, %9 : vector<8x128xf32>
    %11 = arith.cmpf one, %10, %10 : vector<8x128xf32>
    %12 = vector.broadcast %cst_5 : f32 to vector<8x128xf32>
    %13 = arith.addf %6, %12 : vector<8x128xf32>
    %14 = math.absf %10 : vector<8x128xf32>
    %cst_6 = arith.constant 0.000000e+00 : f32
    %15 = vector.broadcast %cst_6 : f32 to vector<8x128xf32>
    %16 = arith.subf %15, %14 : vector<8x128xf32>
    %17 = math.exp %16 : vector<8x128xf32>
    %18 = math.log1p %17 : vector<8x128xf32>
    %19 = arith.addf %8, %18 : vector<8x128xf32>
    %20 = arith.select %11, %13, %19 : vector<8x128xi1>, vector<8x128xf32>
    %c0_7 = arith.constant 0 : index
    %c0_8 = arith.constant 0 : index
    %21 = vector.load %arg3[%c0_7, %c0_8] : memref<128x128xbf16, #tpu.memory_space<vmem>>, vector<128x128xbf16>
    %22 = arith.truncf %20 : vector<8x128xf32> to vector<8x128xbf16>
    %cst_9 = arith.constant dense<0.000000e+00> : vector<8x128xf32>
    %23 = tpu.matmul %22, %21, %cst_9 {dimension_numbers = #tpu.dot_dimension_numbers<[1], [0], [0], [1], [0, 0, 1, 1], [], []>} : vector<8x128xbf16>, vector<128x128xbf16>, vector<8x128xf32> -> vector<8x128xf32>
    %c0_10 = arith.constant 0 : index
    %c0_11 = arith.constant 0 : index
    %24 = vector.load %arg4[%c0_10, %c0_11] : memref<1x128xf32, #tpu.memory_space<vmem>>, vector<1x128xf32>
    %25 = vector.broadcast %24 : vector<1x128xf32> to vector<8x128xf32>
    %26 = arith.addf %23, %25 : vector<8x128xf32>
    %cst_12 = arith.constant 0.000000e+00 : f32
    %27 = vector.broadcast %cst_12 : f32 to vector<8x128xf32>
    %28 = arith.maximumf %26, %27 : vector<8x128xf32>
    %29 = vector.broadcast %cst_12 : f32 to vector<8x128xf32>
    %30 = arith.subf %26, %29 : vector<8x128xf32>
    %31 = arith.cmpf one, %30, %30 : vector<8x128xf32>
    %32 = vector.broadcast %cst_12 : f32 to vector<8x128xf32>
    %33 = arith.addf %26, %32 : vector<8x128xf32>
    %34 = math.absf %30 : vector<8x128xf32>
    %cst_13 = arith.constant 0.000000e+00 : f32
    %35 = vector.broadcast %cst_13 : f32 to vector<8x128xf32>
    %36 = arith.subf %35, %34 : vector<8x128xf32>
    %37 = math.exp %36 : vector<8x128xf32>
    %38 = math.log1p %37 : vector<8x128xf32>
    %39 = arith.addf %28, %38 : vector<8x128xf32>
    %40 = arith.select %31, %33, %39 : vector<8x128xi1>, vector<8x128xf32>
    %c0_14 = arith.constant 0 : index
    %c0_15 = arith.constant 0 : index
    %41 = vector.load %arg5[%c0_14, %c0_15] : memref<128x32xbf16, #tpu.memory_space<vmem>>, vector<128x32xbf16>
    %42 = arith.truncf %40 : vector<8x128xf32> to vector<8x128xbf16>
    %cst_16 = arith.constant dense<0.000000e+00> : vector<8x32xf32>
    %43 = tpu.matmul %42, %41, %cst_16 {dimension_numbers = #tpu.dot_dimension_numbers<[1], [0], [0], [1], [0, 0, 1, 1], [], []>} : vector<8x128xbf16>, vector<128x32xbf16>, vector<8x32xf32> -> vector<8x32xf32>
    %c0_17 = arith.constant 0 : index
    %c0_18 = arith.constant 0 : index
    %44 = vector.load %arg6[%c0_17, %c0_18] : memref<1x32xf32, #tpu.memory_space<vmem>>, vector<1x32xf32>
    %45 = vector.broadcast %44 : vector<1x32xf32> to vector<8x32xf32>
    %46 = arith.addf %43, %45 : vector<8x32xf32>
    %cst_19 = arith.constant dense<0.000000e+00> : vector<32xf32>
    %47 = vector.multi_reduction <add>, %46, %cst_19 [0] : vector<8x32xf32> to vector<32xf32>
    %48 = vector.shape_cast %47 : vector<32xf32> to vector<1x32xf32>
    %cst_20 = arith.constant 8.000000e+00 : f32
    %49 = vector.broadcast %cst_20 : f32 to vector<1x32xf32>
    %50 = arith.divf %48, %49 : vector<1x32xf32>
    %51 = vector.broadcast %50 : vector<1x32xf32> to vector<8x32xf32>
    %52 = arith.subf %46, %51 : vector<8x32xf32>
    %53 = arith.mulf %52, %52 : vector<8x32xf32>
    %cst_21 = arith.constant dense<0.000000e+00> : vector<32xf32>
    %54 = vector.multi_reduction <add>, %53, %cst_21 [0] : vector<8x32xf32> to vector<32xf32>
    %55 = vector.shape_cast %54 : vector<32xf32> to vector<1x32xf32>
    %cst_22 = arith.constant 8.000000e+00 : f32
    %56 = vector.broadcast %cst_22 : f32 to vector<1x32xf32>
    %57 = arith.divf %55, %56 : vector<1x32xf32>
    %cst_23 = arith.constant 9.99999974E-6 : f32
    %58 = vector.broadcast %cst_23 : f32 to vector<1x32xf32>
    %59 = arith.addf %57, %58 : vector<1x32xf32>
    %60 = math.rsqrt %59 : vector<1x32xf32>
    %61 = vector.broadcast %60 : vector<1x32xf32> to vector<8x32xf32>
    %62 = arith.mulf %52, %61 : vector<8x32xf32>
    %63 = vector.extract_strided_slice %62 {offsets = [0, 0], sizes = [8, 16], strides = [1, 1]} : vector<8x32xf32> to vector<8x16xf32>
    %64 = vector.extract_strided_slice %62 {offsets = [0, 16], sizes = [8, 16], strides = [1, 1]} : vector<8x32xf32> to vector<8x16xf32>
    %65 = math.exp %64 : vector<8x16xf32>
    %c0_24 = arith.constant 0 : index
    %c0_25 = arith.constant 0 : index
    %66 = vector.load %arg8[%c0_24, %c0_25] : memref<8x16xf32, #tpu.memory_space<vmem>>, vector<8x16xf32>
    %cst_26 = arith.constant 5.000000e-01 : f32
    %67 = vector.broadcast %cst_26 : f32 to vector<8x16xf32>
    %68 = arith.mulf %67, %64 : vector<8x16xf32>
    %69 = math.exp %68 : vector<8x16xf32>
    %70 = arith.mulf %66, %69 : vector<8x16xf32>
    %71 = arith.addf %63, %70 : vector<8x16xf32>
    %cst_27 = arith.constant dense<0xFF800000> : vector<8xf32>
    %72 = vector.multi_reduction <maximumf>, %71, %cst_27 [1] : vector<8x16xf32> to vector<8xf32>
    %73 = vector.shape_cast %72 : vector<8xf32> to vector<8x1xf32>
    %74 = vector.broadcast %73 : vector<8x1xf32> to vector<8x16xf32>
    %75 = arith.subf %71, %74 : vector<8x16xf32>
    %76 = math.exp %75 : vector<8x16xf32>
    %cst_28 = arith.constant dense<0.000000e+00> : vector<8xf32>
    %77 = vector.multi_reduction <add>, %76, %cst_28 [1] : vector<8x16xf32> to vector<8xf32>
    %78 = vector.shape_cast %77 : vector<8xf32> to vector<8x1xf32>
    %79 = tpu.reciprocal %78 {approx = true} : vector<8x1xf32> -> vector<8x1xf32>
    %80 = vector.broadcast %79 : vector<8x1xf32> to vector<8x16xf32>
    %81 = arith.mulf %76, %80 : vector<8x16xf32>
    %c0_29 = arith.constant 0 : index
    %c0_30 = arith.constant 0 : index
    %82 = vector.load %arg7[%c0_29, %c0_30] : memref<16x256xbf16, #tpu.memory_space<vmem>>, vector<16x256xbf16>
    %83 = arith.truncf %81 : vector<8x16xf32> to vector<8x16xbf16>
    %cst_31 = arith.constant dense<0.000000e+00> : vector<8x256xf32>
    %84 = tpu.matmul %83, %82, %cst_31 {dimension_numbers = #tpu.dot_dimension_numbers<[1], [0], [0], [1], [0, 0, 1, 1], [], []>} : vector<8x16xbf16>, vector<16x256xbf16>, vector<8x256xf32> -> vector<8x256xf32>
    %cst_32 = arith.constant dense<0.000000e+00> : vector<256xf32>
    %85 = vector.multi_reduction <add>, %84, %cst_32 [0] : vector<8x256xf32> to vector<256xf32>
    %86 = vector.shape_cast %85 : vector<256xf32> to vector<1x256xf32>
    %cst_33 = arith.constant 8.000000e+00 : f32
    %87 = vector.broadcast %cst_33 : f32 to vector<1x256xf32>
    %88 = arith.divf %86, %87 : vector<1x256xf32>
    %89 = vector.broadcast %88 : vector<1x256xf32> to vector<8x256xf32>
    %90 = arith.subf %84, %89 : vector<8x256xf32>
    %91 = arith.mulf %90, %90 : vector<8x256xf32>
    %cst_34 = arith.constant dense<0.000000e+00> : vector<256xf32>
    %92 = vector.multi_reduction <add>, %91, %cst_34 [0] : vector<8x256xf32> to vector<256xf32>
    %93 = vector.shape_cast %92 : vector<256xf32> to vector<1x256xf32>
    %cst_35 = arith.constant 8.000000e+00 : f32
    %94 = vector.broadcast %cst_35 : f32 to vector<1x256xf32>
    %95 = arith.divf %93, %94 : vector<1x256xf32>
    %cst_36 = arith.constant 9.99999974E-6 : f32
    %96 = vector.broadcast %cst_36 : f32 to vector<1x256xf32>
    %97 = arith.addf %95, %96 : vector<1x256xf32>
    %98 = math.rsqrt %97 : vector<1x256xf32>
    %99 = vector.broadcast %98 : vector<1x256xf32> to vector<8x256xf32>
    %100 = arith.mulf %90, %99 : vector<8x256xf32>
    %cst_37 = arith.constant dense<0xFF800000> : vector<8xf32>
    %101 = vector.multi_reduction <maximumf>, %100, %cst_37 [1] : vector<8x256xf32> to vector<8xf32>
    %102 = vector.shape_cast %101 : vector<8xf32> to vector<8x1xf32>
    %103 = vector.broadcast %102 : vector<8x1xf32> to vector<8x256xf32>
    %104 = arith.subf %100, %103 : vector<8x256xf32>
    %105 = math.exp %104 : vector<8x256xf32>
    %cst_38 = arith.constant dense<0.000000e+00> : vector<8xf32>
    %106 = vector.multi_reduction <add>, %105, %cst_38 [1] : vector<8x256xf32> to vector<8xf32>
    %107 = vector.shape_cast %106 : vector<8xf32> to vector<8x1xf32>
    %108 = tpu.reciprocal %107 {approx = true} : vector<8x1xf32> -> vector<8x1xf32>
    %109 = vector.broadcast %108 : vector<8x1xf32> to vector<8x256xf32>
    %110 = arith.mulf %105, %109 : vector<8x256xf32>
    %111 = tpu.concatenate %62, %65, %81 in 1 : vector<8x32xf32>, vector<8x16xf32>, vector<8x16xf32> -> vector<8x64xf32>
    %c0_39 = arith.constant 0 : index
    %c0_40 = arith.constant 0 : index
    %112 = vector.load %arg9[%c0_39, %c0_40] : memref<8x64xf32, #tpu.memory_space<vmem>>, vector<8x64xf32>
    tpu.vector_store %arg9[%c0_39, %c0_40], %111 {strides = array<i32>} : memref<8x64xf32, #tpu.memory_space<vmem>>, vector<8x64xf32>,
    %c0_41 = arith.constant 0 : index
    %c0_42 = arith.constant 0 : index
    %113 = vector.load %arg10[%c0_41, %c0_42] : memref<8x256xf32, #tpu.memory_space<vmem>>, vector<8x256xf32>
    tpu.vector_store %arg10[%c0_41, %c0_42], %110 {strides = array<i32>} : memref<8x256xf32, #tpu.memory_space<vmem>>, vector<8x256xf32>,
    return
  }
}

</mosaic_0001>

<bundles_post_ra>
// kernel: tpu_custom_call.1
= control target key start
LH: loop header
LB: loop body
LE: loop exit
PB: predicated region body
PF: predicated region fallthrough
CT: control target
= control target key end

     0   :  { %16 = vsyncpa [#allocation3], 0  ;;  %s1186_s0 = inlined_call_operand.vmem [shape: f32[8,256], index: 0, kind: input, shape index: {}]   ;;  %s1187_s1 = inlined_call_operand.hbm [shape: bf16[256,128], index: 1, kind: input, shape index: {}]   ;;  %s1188_s2 = inlined_call_operand.vmem [shape: f32[1,128], index: 2, kind: input, shape index: {}]   ;;  %s1189_s3 = inlined_call_operand.vmem [shape: bf16[128,128], index: 3, kind: input, shape index: {}]   ;;  %s1190_s4 = inlined_call_operand.vmem [shape: f32[1,128], index: 4, kind: input, shape index: {}]   ;;  %s1191_s5 = inlined_call_operand.vmem [shape: bf16[128,32], index: 5, kind: input, shape index: {}]   ;;  %s1192_s6 = inlined_call_operand.vmem [shape: f32[1,32], index: 6, kind: input, shape index: {}]   ;;  %s1193_s7 = inlined_call_operand.hbm [shape: bf16[16,256], index: 7, kind: input, shape index: {}]   ;;  %s1194_s8 = inlined_call_operand.hbm [shape: f32[8,16], index: 8, kind: input, shape index: {}]   ;;  %s1195_s9 = inlined_call_operand.hbm [shape: f32[8,64], index: 9, kind: output, shape index: {0}]   ;;  %s1196_s10 = inlined_call_operand.hbm [shape: f32[8,256], index: 10, kind: output, shape index: {1}]  }
   0x1   :  { %17 = vsyncpa [#allocation6], 0 }
   0x2   :  { %18 = vsyncpa [#allocation4], 0  ;;  %s49_s15 = sshll.u32 %s1193_s7, 4  ;;  %s50_s15 = int_to_ptr.hbm [resolvable:$true] %s49_s15 }
   0x3   :  { %19 = vsyncpa [#allocation10], 0  ;;  %s1014_s16 = smov [#allocation5]   ;;  %s26_s20 = sshll.u32 %s1187_s1, 4  ;;  %s27_s20 = int_to_ptr.hbm [resolvable:$true] %s26_s20 }
   0x4   :  { %s51_s17 = sshll.u32 %s1014_s16, 4  ;;  %s1015_s21 = smov 128   ;;  %s52_s17 = int_to_ptr.vmem [resolvable:$true] %s51_s17 }
   0x5   :  { %s1016_s22 = smov 8   ;;  %s1017_s23 = smov [#allocation2]  }
   0x6   :  { %57 = dma.hbm_to_vmem [thread:$0]  %s50_s15, 256, %s52_s17, [#allocation6], %s1015_s21, %s1015_s21, %s1016_s22  }
   0x7   :  { %s28_s24 = sshll.u32 %s1017_s23, 4  ;;  %s1018_s25 = smov 64   ;;  %s29_s24 = int_to_ptr.vmem [resolvable:$true] %s28_s24 }
   0x8   :  { %s1019_s26 = smov 4   ;;  %s63_s28 = sshll.u32 %s1194_s8, 4  ;;  %s64_s28 = int_to_ptr.hbm [resolvable:$true] %s63_s28 }
   0x9   :  { %34 = dma.hbm_to_vmem [thread:$0]  %s27_s20, 2048, %s29_s24, [#allocation3], %s1018_s25, %s1018_s25, %s1019_s26  }
   0xa   :  { %s1020_s29 = smov [#allocation7]  }
   0xb   :  { %s65_s30 = sshll.u32 %s1020_s29, 4  ;;  %s66_s30 = int_to_ptr.vmem [resolvable:$true] %s65_s30 }
   0xc   :  { %68 = dma.hbm_to_vmem [thread:$0]  %s64_s28, 128, %s66_s30, [#allocation6]  }
   0xd   :  { %1006 = dma.done.wait [#allocation3], 2048  }
   0xe   :  { %1007 = vsyncadd [#allocation3], 4294965248 }
   0xf   :  { %1008 = dma.done.wait [#allocation6], 384  }
  0x10   :  { %1009 = vsyncadd [#allocation6], 4294966912  ;;  %v813_v0 = vld [vmem:[#allocation2 + $0x38] sm:$0xff]  ;;  %v812_v2 = vld [vmem:[#allocation2 + $0x30] sm:$0xff]  ;;  %vm444_vm4 = vcmask 261120   ;;  %vm494_vm9 = vcmask 130048  }
  0x11   :  { %v821_v1 = vld [vmem:[#allocation2 + $0x78] sm:$0xff]  ;;  %218 = vmatpush.bf16.msra.mxu0 %v813_v0  ;;  %v820_v3 = vld [vmem:[#allocation2 + $0x70] sm:$0xff]  ;;  %v811_v4 = vld [vmem:[#allocation2 + $0x28] sm:$0xff]  ;;  %s1023_s22 = smov 48   ;;  %s1024_s23 = smov 16  }
  0x12   :  { %231 = vmatpush.bf16.msra.mxu1 %v821_v1  ;;  %v819_v5 = vld [vmem:[#allocation2 + $0x68] sm:$0xff]  ;;  %v810_v6 = vld [vmem:[#allocation2 + $0x20] sm:$0xff]  ;;  %v809_v8 = vld [vmem:[#allocation2 + $0x18] sm:$0xff]  ;;  %s1025_s24 = smov [#allocation9]   ;;  %s652_s27 = sshll.u32 %s1196_s10, 4  ;;  %s653_s27 = int_to_ptr.hbm [resolvable:$true] %s652_s27 }
  0x13   :  { %v818_v7 = vld [vmem:[#allocation2 + $0x60] sm:$0xff]  ;;  %v817_v9 = vld [vmem:[#allocation2 + $0x58] sm:$0xff]  ;;  %v808_v10 = vld [vmem:[#allocation2 + $0x10] sm:$0xff]  ;;  %s650_s25 = sshll.u32 %s1025_s24, 4  ;;  %s1026_s28 = smov [#allocation8]   ;;  %s651_s25 = int_to_ptr.vmem [resolvable:$true] %s650_s25 }
  0x14   :  { %v816_v11 = vld [vmem:[#allocation2 + $0x50] sm:$0xff]  ;;  %v807_v12 = vld [vmem:[#allocation2 + $0x8] sm:$0xff]  ;;  %v806_v14 = vld [vmem:[#allocation2] sm:$0xff]  ;;  %s641_s30 = sshll.u32 %s1195_s9, 4  ;;  %s642_s30 = int_to_ptr.hbm [resolvable:$true] %s641_s30 }
  0x15   :  { %219 = vmatpush.bf16.msra.mxu0 %v812_v2  ;;  %v815_v13 = vld [vmem:[#allocation2 + $0x48] sm:$0xff]  ;;  %v814_v15 = vld [vmem:[#allocation2 + $0x40] sm:$0xff]  ;;  %v829_v20 = vld [vmem:[%s1189_s3 + $0x38] sm:$0xff] }
  0x16   :  { %232 = vmatpush.bf16.msra.mxu1 %v820_v3  ;;  %v82_v16 = vld [vmem:[%s1186_s0] sm:$0xff]  ;;  %v83_v17 = vld [vmem:[%s1186_s0 + $0x8] sm:$0xff]  ;;  %331 = vmatpush.bf16.msra.mxu2 %v829_v20  ;;  %v828_v21 = vld [vmem:[%s1189_s3 + $0x30] sm:$0xff] }
  0x17   :  { %v116_v18 = vpack.c.bf16 %v82_v16, %v82_v16  ;;  %v117_v19 = vpack.c.bf16 %v83_v17, %v83_v17  ;;  %v827_v22 = vld [vmem:[%s1189_s3 + $0x28] sm:$0xff]  ;;  %v826_v23 = vld [vmem:[%s1189_s3 + $0x20] sm:$0xff]  ;;  %v825_v24 = vld [vmem:[%s1189_s3 + $0x18] sm:$0xff] }
  0x18   :  { %v824_v25 = vld [vmem:[%s1189_s3 + $0x10] sm:$0xff]  ;;  %v823_v26 = vld [vmem:[%s1189_s3 + $0x8] sm:$0xff]  ;;  %v822_v27 = vld [vmem:[%s1189_s3] sm:$0xff] }
  0x19   :  { %220 = vmatpush.bf16.msra.mxu0 %v811_v4  ;;  %v853_v28 = vld [vmem:[%s1188_s2] ss:$0 sm:$0xff]  ;;  %v837_v51 = vld [vmem:[%s1191_s5 + $0x38] sm:$0xff]  ;;  %v836_v52 = vld [vmem:[%s1191_s5 + $0x30] sm:$0xff]  ;;  %s639_s2 = sshll.u32 %s1026_s28, 4  ;;  %s640_s2 = int_to_ptr.vmem [resolvable:$true] %s639_s2 }
  0x1a   :  { %233 = vmatpush.bf16.msra.mxu1 %v819_v5  ;;  %332 = vmatpush.bf16.msra.mxu2 %v828_v21  ;;  %v835_v53 = vld [vmem:[%s1191_s5 + $0x28] sm:$0xff]  ;;  %v834_v54 = vld [vmem:[%s1191_s5 + $0x20] sm:$0xff]  ;;  %v833_v55 = vld [vmem:[%s1191_s5 + $0x18] sm:$0xff] }
  0x1b   :  { %431 = vmatpush.bf16.msra.mxu3 %v837_v51  ;;  %v832_v56 = vld [vmem:[%s1191_s5 + $0x10] sm:$0xff]  ;;  %v831_v57 = vld [vmem:[%s1191_s5 + $0x8] sm:$0xff]  ;;  %v830_v58 = vld [vmem:[%s1191_s5] sm:$0xff] }
  0x1c   :  { %v854_v59 = vld [vmem:[%s1190_s4] ss:$0 sm:$0xff] }
  0x1d   :  { %221 = vmatpush.bf16.msra.mxu0 %v810_v6  ;;  %v855_v17 = vld [vmem:[%s1192_s6] ss:$0 sm:$0xff]  ;;  %s1022_s6 = smov 112  }
  0x1e   :  { %234 = vmatpush.bf16.msra.mxu1 %v818_v7  ;;  %333 = vmatpush.bf16.msra.mxu2 %v827_v22 }
  0x1f   :  { %432 = vmatpush.bf16.msra.mxu3 %v836_v52 }
  0x21   :  { %222 = vmatpush.bf16.msra.mxu0 %v809_v8 }
  0x22   :  { %235 = vmatpush.bf16.msra.mxu1 %v817_v9  ;;  %334 = vmatpush.bf16.msra.mxu2 %v826_v23 }
  0x23   :  { %433 = vmatpush.bf16.msra.mxu3 %v835_v53 }
  0x25   :  { %223 = vmatpush.bf16.msra.mxu0 %v808_v10 }
  0x26   :  { %236 = vmatpush.bf16.msra.mxu1 %v816_v11  ;;  %335 = vmatpush.bf16.msra.mxu2 %v825_v24 }
  0x27   :  { %434 = vmatpush.bf16.msra.mxu3 %v834_v54 }
  0x29   :  { %224 = vmatpush.bf16.msra.mxu0 %v807_v12 }
  0x2a   :  { %237 = vmatpush.bf16.msra.mxu1 %v815_v13  ;;  %336 = vmatpush.bf16.msra.mxu2 %v824_v25 }
  0x2b   :  { %435 = vmatpush.bf16.msra.mxu3 %v833_v55 }
  0x2d   :  { %225 = vmatpush.bf16.msra.mxu0 %v806_v14 }
  0x2e   :  { %238 = vmatpush.bf16.msra.mxu1 %v814_v15  ;;  %337 = vmatpush.bf16.msra.mxu2 %v823_v26  ;;  %v1021_v15 = vmov 8.0  }
  0x2f   :  { %436 = vmatpush.bf16.msra.mxu3 %v832_v56  ;;  %v484_v56 = vld [vmem:[#allocation7] sm:$0xff] }
  0x30   :  { %226 = vmatmul.bf16.vlgmr.msra.gmra.mxu0 %v116_v18 }
  0x31   :  { %239 = vmatmul.bf16.vlgmr.msra.gmra.mxu1 %v117_v19 }
  0x32   :  { %338 = vmatpush.bf16.msra.mxu2 %v822_v27 }
  0x33   :  { %437 = vmatpush.bf16.msra.mxu3 %v831_v57 }
  0x37   :  { %438 = vmatpush.bf16.msra.mxu3 %v830_v58 }
  0xad   :  { %v227_v29 = vpop.f32.mrf.mxu0 }
  0xae   :  { %v240_v30 = vpop.f32.mrf.mxu1  ;;  %v228_v31 = vadd.f32 %v853_v28, %v227_v29 }
  0xb0   :  { %v241_v32 = vadd.f32 %v240_v30, %v228_v31 }
  0xb2   :  { %v247_v33 = vand.u32 2147483647, %v241_v32  ;;  %v244_v46 = vmax.f32 %v241_v32, 0.0  ;;  %vm245_vm1 = vcmp.ne.f32.partialorder %v241_v32, %v241_v32 }
  0xb4   :  { %v248_v34 = vsub.f32 0.0, %v247_v33 }
  0xb5   :  { %v229_v35 = vpop.f32.mrf.mxu0 }
  0xb6   :  { %v242_v36 = vpop.f32.mrf.mxu1  ;;  %v249_v37 = vmul.f32 1.442695, %v248_v34 }
  0xb8   :  { %856 = vpow2.f32 %v249_v37 }
  0xbe   :  { %v857_v38 = vpop.eup %856 }
  0xbf   :  { %v251_v39 = vadd.f32 1.0, %v857_v38  ;;  %v254_v40 = vmul.f32 -0.5, %v857_v38  ;;  %v257_v42 = vand.u32 2147483647, %v857_v38 }
  0xc1   :  { %858 = vlog2.f32 %v251_v39  ;;  %v255_v41 = vadd.f32 1.0, %v254_v40  ;;  %vm258_vm0 = vcmp.lt.f32.partialorder %v257_v42, 0.0004427343 }
  0xc3   :  { %v256_v45 = vmul.f32 %v857_v38, %v255_v41 }
  0xc7   :  { %v859_v43 = vpop.eup %858 }
  0xc8   :  { %v253_v44 = vmul.f32 0.6931472, %v859_v43 }
  0xca   :  { %v259_v47 = vsel %vm258_vm0, %v256_v45, %v253_v44  ;;  %vm628_vm0 = vcmask 392192  }
  0xcb   :  { %v260_v48 = vadd.f32 %v259_v47, %v244_v46 }
  0xcd   :  { %v261_v49 = vsel %vm245_vm1, %v241_v32, %v260_v48  ;;  %vm630_vm1 = vcmask 523264  }
  0xce   :  { %v278_v50 = vpack.c.bf16 %v261_v49, %v261_v49 }
  0xd0   :  { %339 = vmatmul.bf16.vlgmr.msra.gmra.mxu2 %v278_v50 }
 0x153   :  { %v340_v60 = vpop.f32.mrf.mxu2 }
 0x154   :  { %v341_v61 = vadd.f32 %v854_v59, %v340_v60 }
 0x156   :  { %v347_v62 = vand.u32 2147483647, %v341_v61  ;;  %v344_v10 = vmax.f32 %v341_v61, 0.0  ;;  %vm345_vm3 = vcmp.ne.f32.partialorder %v341_v61, %v341_v61 }
 0x158   :  { %v348_v63 = vsub.f32 0.0, %v347_v62  ;;  %v839_v62 = vld [vmem:[#allocation5 + $0x4] sm:$0xf0] }
 0x15a   :  { %v349_v0 = vmul.f32 1.442695, %v348_v63  ;;  %v838_v63 = vld [vmem:[#allocation5 + $0x4] sm:$0xf] }
 0x15b   :  { %v342_v1 = vpop.f32.mrf.mxu2 }
 0x15c   :  { %860 = vpow2.f32 %v349_v0  ;;  %v800_v1 = vld [vmem:[#allocation5 + $0x8] sm:$0xf0] }
 0x162   :  { %v861_v2 = vpop.eup %860 }
 0x163   :  { %v351_v3 = vadd.f32 1.0, %v861_v2  ;;  %v354_v4 = vmul.f32 -0.5, %v861_v2  ;;  %v357_v6 = vand.u32 2147483647, %v861_v2 }
 0x165   :  { %862 = vlog2.f32 %v351_v3  ;;  %v355_v5 = vadd.f32 1.0, %v354_v4  ;;  %vm358_vm2 = vcmp.lt.f32.partialorder %v357_v6, 0.0004427343 }
 0x166   :  { %864 = vrcp.f32 %v1021_v15 }
 0x167   :  { %v356_v9 = vmul.f32 %v861_v2, %v355_v5  ;;  %v803_v2 = vor.u32 %v838_v63, %v800_v1 }
 0x169   :  { %542 = vmatpush.bf16.msrb.mxu1 %v803_v2 }
 0x16b   :  { %v863_v7 = vpop.eup %862 }
 0x16c   :  { %v353_v8 = vmul.f32 0.6931472, %v863_v7  ;;  %v865_v16 = vpop.eup %864 }
 0x16d   :  { %v453_v18 = vmul.f32 8.0, %v865_v16  ;;  %vm457_vm5 = vweird.f32 %v865_v16 }
 0x16e   :  { %v359_v11 = vsel %vm358_vm2, %v356_v9, %v353_v8 }
 0x16f   :  { %v360_v12 = vadd.f32 %v359_v11, %v344_v10  ;;  %v454_v21 = vsub.f32 1.0, %v453_v18 }
 0x171   :  { %v361_v13 = vsel %vm345_vm3, %v341_v61, %v360_v12  ;;  %v455_v24 = vmul.f32 %v865_v16, %v454_v21  ;;  %v798_v61 = vld [vmem:[#allocation5] sm:$0xf] }
 0x172   :  { %v378_v14 = vpack.c.bf16 %v361_v13, %v361_v13  ;;  %v799_v0 = vor.u32 %v839_v62, %v798_v61 }
 0x173   :  { %v456_v28 = vadd.f32 %v865_v16, %v455_v24 }
 0x174   :  { %439 = vmatmul.bf16.vlgmr.msra.gmra.mxu3 %v378_v14  ;;  %529 = vmatpush.bf16.msrb.mxu0 %v799_v0 }
 0x175   :  { %v1155_v31 = vsel %vm457_vm5, %v865_v16, %v456_v28 }
 0x1f7   :  { %v440_v19 = vpop.f32.mrf.mxu3 }
 0x1f8   :  { %v441_v20 = vadd.f32 %v855_v17, %v440_v19 }
 0x1fa   :  { %v445_v22 = vsel %vm444_vm4, %v441_v20, 0.0 }
 0x1fb   :  { %v446_v23 = vrot.slane %v445_v22, 4 }
 0x1fd   :  { %v447_v25 = vadd.f32 %v446_v23, %v445_v22 }
 0x1ff   :  { %v448_v26 = vrot.slane %v447_v25, 2  ;;  %v442_v27 = vpop.f32.mrf.mxu3 }
 0x201   :  { %v449_v29 = vadd.f32 %v448_v26, %v447_v25 }
 0x203   :  { %v450_v30 = vrot.slane %v449_v29, 1 }
 0x205   :  { %v451_v32 = vadd.f32 %v450_v30, %v449_v29 }
 0x207   :  { %v459_v33 = vmul.f32 %v1155_v31, %v451_v32 }
 0x209   :  { %v460_v34 = vsub.f32 %v441_v20, %v459_v33 }
 0x20b   :  { %v461_v35 = vmul.f32 %v460_v34, %v460_v34 }
 0x20d   :  { %v462_v36 = vsel %vm444_vm4, %v461_v35, 0.0 }
 0x20e   :  { %v463_v37 = vrot.slane %v462_v36, 4 }
 0x210   :  { %v464_v38 = vadd.f32 %v463_v37, %v462_v36 }
 0x212   :  { %v465_v39 = vrot.slane %v464_v38, 2 }
 0x214   :  { %v466_v40 = vadd.f32 %v465_v39, %v464_v38 }
 0x216   :  { %v467_v41 = vrot.slane %v466_v40, 1 }
 0x218   :  { %v468_v42 = vadd.f32 %v467_v41, %v466_v40 }
 0x21a   :  { %v469_v43 = vmul.f32 %v468_v42, %v1155_v31 }
 0x21c   :  { %v470_v44 = vadd.f32 1e-05, %v469_v43 }
 0x21e   :  { %866 = vrsqrt.f32 %v470_v44  ;;  %vm477_vm7 = vweird.f32 %v470_v44 }
 0x224   :  { %v867_v45 = vpop.eup %866 }
 0x225   :  { %v472_v46 = vmul.f32 %v867_v45, %v470_v44  ;;  %vm478_vm6 = vweird.f32 %v867_v45 }
 0x226   :  { %vm479_vm8 = vmor %vm477_vm7, %vm478_vm6 }
 0x227   :  { %v473_v47 = vmul.f32 %v867_v45, %v472_v46 }
 0x229   :  { %v474_v48 = vmul.f32 0.5, %v473_v47 }
 0x22b   :  { %v475_v49 = vsub.f32 1.5, %v474_v48 }
 0x22d   :  { %v476_v50 = vmul.f32 %v867_v45, %v475_v49 }
 0x22f   :  { %v480_v51 = vsel %vm479_vm8, %v867_v45, %v476_v50 }
 0x230   :  { %v1160_v52 = vmul.f32 %v480_v51, %v460_v34 }
 0x232   :  { %v485_v53 = vmul.f32 0.5, %v1160_v52 }
 0x234   :  { %v486_v54 = vmul.f32 1.442695, %v485_v53 }
 0x236   :  { %868 = vpow2.f32 %v486_v54 }
 0x23c   :  { %v869_v55 = vpop.eup %868 }
 0x23d   :  { %489 = vrot.lane.b32.xlu0 %v869_v55, %s1022_s6 }
 0x2af   :  { %v490_v57 = vpop.permute.xlu0 %489 }
 0x2b0   :  { %v492_v58 = vmul.f32 %v490_v57, %v484_v56 }
 0x2b2   :  { %v493_v59 = vadd.f32 %v492_v58, %v1160_v52 }
 0x2b4   :  { %v495_v60 = vsel %vm494_vm9, %v493_v59, -inf }
 0x2b5   :  { %496 = vmax.xlane.f32.xlu0 %v495_v60 }
 0x328   :  { %v497_v3 = vpop.xlane.xlu0 %496 }
 0x329   :  { %v498_v4 = vsub.f32 %v493_v59, %v497_v3 }
 0x32b   :  { %v499_v5 = vmul.f32 1.442695, %v498_v4 }
 0x32d   :  { %870 = vpow2.f32 %v499_v5 }
 0x333   :  { %v871_v6 = vpop.eup %870 }
 0x334   :  { %v501_v7 = vsel %vm494_vm9, %v871_v6, 0.0 }
 0x335   :  { %502 = vadd.xlane.f32.xlu1 %v501_v7 }
 0x3a8   :  { %v503_v8 = vpop.xlane.xlu1 %502 }
 0x3a9   :  { %872 = vrcp.f32 %v503_v8 }
 0x3af   :  { %v873_v9 = vpop.eup %872 }
 0x3b0   :  { %v1166_v10 = vmul.f32 %v873_v9, %v871_v6 }
 0x3b2   :  { %v508_v11 = vpack.c.bf16 %v1166_v10, %v1166_v10 }
 0x3b4   :  { %804 = vmatmul.msk.bf16.vlgmr.msrb.gmra.mxu0 %vm494_vm9, %v508_v11  ;;  %805 = vmatmul.msk.bf16.vlgmr.msrb.gmra.mxu1 %vm494_vm9, %v508_v11 }
 0x431   :  { %v531_v12 = vpop.f32.mrf.mxu0  ;;  %v544_v13 = vpop.f32.mrf.mxu1 }
 0x432   :  { %v548_v14 = vrot.slane %v531_v12, 4  ;;  %v554_v15 = vrot.slane %v544_v13, 4 }
 0x434   :  { %v549_v16 = vadd.f32 %v548_v14, %v531_v12  ;;  %v555_v17 = vadd.f32 %v554_v15, %v544_v13 }
 0x436   :  { %v550_v18 = vrot.slane %v549_v16, 2  ;;  %v556_v19 = vrot.slane %v555_v17, 2 }
 0x438   :  { %v551_v20 = vadd.f32 %v550_v18, %v549_v16  ;;  %v557_v21 = vadd.f32 %v556_v19, %v555_v17 }
 0x439   :  { %v533_v22 = vpop.f32.mrf.mxu0  ;;  %v546_v23 = vpop.f32.mrf.mxu1 }
 0x43a   :  { %v552_v24 = vrot.slane %v551_v20, 1  ;;  %v558_v25 = vrot.slane %v557_v21, 1 }
 0x43c   :  { %v553_v26 = vadd.f32 %v552_v24, %v551_v20  ;;  %v559_v27 = vadd.f32 %v558_v25, %v557_v21 }
 0x43e   :  { %v560_v28 = vmul.f32 %v553_v26, %v1155_v31  ;;  %v561_v29 = vmul.f32 %v559_v27, %v1155_v31 }
 0x440   :  { %v562_v30 = vsub.f32 %v531_v12, %v560_v28  ;;  %v563_v32 = vsub.f32 %v544_v13, %v561_v29  ;;  %v482_v13 = vmul.f32 1.442695, %v1160_v52 }
 0x442   :  { %v564_v33 = vmul.f32 %v562_v30, %v562_v30  ;;  %v565_v34 = vmul.f32 %v563_v32, %v563_v32 }
 0x444   :  { %v566_v35 = vrot.slane %v564_v33, 4  ;;  %v572_v36 = vrot.slane %v565_v34, 4 }
 0x446   :  { %v567_v37 = vadd.f32 %v566_v35, %v564_v33  ;;  %v573_v38 = vadd.f32 %v572_v36, %v565_v34 }
 0x448   :  { %v568_v39 = vrot.slane %v567_v37, 2  ;;  %v574_v40 = vrot.slane %v573_v38, 2 }
 0x44a   :  { %v569_v41 = vadd.f32 %v568_v39, %v567_v37  ;;  %v575_v42 = vadd.f32 %v574_v40, %v573_v38 }
 0x44c   :  { %v570_v43 = vrot.slane %v569_v41, 1  ;;  %v576_v44 = vrot.slane %v575_v42, 1 }
 0x44e   :  { %v571_v45 = vadd.f32 %v570_v43, %v569_v41  ;;  %v577_v46 = vadd.f32 %v576_v44, %v575_v42 }
 0x450   :  { %v578_v47 = vmul.f32 %v571_v45, %v1155_v31  ;;  %v579_v48 = vmul.f32 %v577_v46, %v1155_v31 }
 0x452   :  { %v580_v49 = vadd.f32 1e-05, %v578_v47  ;;  %v581_v50 = vadd.f32 1e-05, %v579_v48 }
 0x454   :  { %874 = vrsqrt.f32 %v580_v49  ;;  %vm588_vm12 = vweird.f32 %v580_v49  ;;  %vm598_vm14 = vweird.f32 %v581_v50 }
 0x455   :  { %876 = vrsqrt.f32 %v581_v50 }
 0x45a   :  { %v875_v51 = vpop.eup %874 }
 0x45b   :  { %v877_v53 = vpop.eup %876  ;;  %v583_v54 = vmul.f32 %v875_v51, %v580_v49  ;;  %vm589_vm10 = vweird.f32 %v875_v51 }
 0x45c   :  { %v593_v55 = vmul.f32 %v877_v53, %v581_v50  ;;  %vm599_vm11 = vweird.f32 %v877_v53  ;;  %vm590_vm13 = vmor %vm588_vm12, %vm589_vm10 }
 0x45d   :  { %v584_v56 = vmul.f32 %v875_v51, %v583_v54  ;;  %vm600_vm15 = vmor %vm598_vm14, %vm599_vm11 }
 0x45e   :  { %v594_v57 = vmul.f32 %v877_v53, %v593_v55 }
 0x45f   :  { %v585_v58 = vmul.f32 0.5, %v584_v56 }
 0x460   :  { %v595_v59 = vmul.f32 0.5, %v594_v57 }
 0x461   :  { %v586_v60 = vsub.f32 1.5, %v585_v58 }
 0x462   :  { %v596_v61 = vsub.f32 1.5, %v595_v59 }
 0x463   :  { %v587_v62 = vmul.f32 %v875_v51, %v586_v60 }
 0x464   :  { %v597_v31 = vmul.f32 %v877_v53, %v596_v61 }
 0x465   :  { %v591_v63 = vsel %vm590_vm13, %v875_v51, %v587_v62 }
 0x466   :  { %v601_v0 = vsel %vm600_vm15, %v877_v53, %v597_v31  ;;  %v602_v1 = vmul.f32 %v591_v63, %v562_v30 }
 0x467   :  { %v603_v2 = vmul.f32 %v601_v0, %v563_v32 }
 0x469   :  { %v604_v3 = vmax.f32 %v602_v1, %v603_v2 }
 0x46b   :  { %605 = vmax.xlane.f32.xlu1 %v604_v3 }
 0x484   :  { %624 = vrot.lane.b32.xlu1 %v1166_v10, %s1023_s22 }
 0x4de   :  { %v606_v4 = vpop.xlane.xlu1 %605 }
 0x4df   :  { %v607_v5 = vsub.f32 %v602_v1, %v606_v4  ;;  %v608_v6 = vsub.f32 %v603_v2, %v606_v4 }
 0x4e1   :  { %v609_v7 = vmul.f32 1.442695, %v607_v5  ;;  %v611_v8 = vmul.f32 1.442695, %v608_v6 }
 0x4e3   :  { %878 = vpow2.f32 %v609_v7 }
 0x4e4   :  { %880 = vpow2.f32 %v611_v8 }
 0x4e5   :  { %882 = vpow2.f32 %v482_v13 }
 0x4e9   :  { %v879_v9 = vpop.eup %878 }
 0x4ea   :  { %v881_v11 = vpop.eup %880 }
 0x4eb   :  { %v613_v12 = vadd.f32 %v881_v11, %v879_v9  ;;  %v883_v14 = vpop.eup %882 }
 0x4ed   :  { %614 = vadd.xlane.f32.xlu2 %v613_v12 }
 0x4f6   :  { %v625_v19 = vpop.permute.xlu1 %624 }
 0x505   :  { %620 = vrot.lane.b32.xlu2 %v883_v14, %s1024_s23 }
 0x560   :  { %v615_v15 = vpop.xlane.xlu2 %614 }
 0x561   :  { %884 = vrcp.f32 %v615_v15 }
 0x567   :  { %v885_v10 = vpop.eup %884 }
 0x568   :  { %v617_v16 = vmul.f32 %v885_v10, %v879_v9  ;;  %v618_v17 = vmul.f32 %v885_v10, %v881_v11  ;;  %v621_v18 = vpop.permute.xlu2 %620 }
 0x569   :  { %v627_v20 = vsel %vm444_vm4, %v1160_v52, %v621_v18 }
 0x56a   :  { %632 = vst [vmem:[#allocation9] sm:$0xff] %v617_v16  ;;  %v629_v21 = vsel %vm628_vm0, %v627_v20, %v625_v19 }
 0x56b   :  { %633 = vst [vmem:[#allocation9 + $0x8] sm:$0xff] %v618_v17 }
 0x56c   :  { %631 = vst.msk [vmem:[#allocation8] sm:$0xff] %vm630_vm1, %v629_v21  ;;  %655 = dma.vmem_to_hbm [thread:$0]  %s651_s25, 256, %s653_s27, [#allocation10]  }
 0x56d   :  { %644 = dma.vmem_to_hbm [thread:$0]  %s640_s2, 128, %s642_s30, [#allocation4]  }
 0x56e   :  { %1010 = dma.done.wait [#allocation4], 128  }
 0x56f   :  { %1011 = vsyncadd [#allocation4], 4294967168 }
 0x570   :  { %1012 = dma.done.wait [#allocation10], 256  }
 0x571   :  { %1013 = vsyncadd [#allocation10], 4294967040 }
 0x572   :  { %664 = vsyncpa [#allocation3], 1 }
 0x573   :  { %665 = vsyncpa [#allocation6], 1 }
 0x574   :  { %666 = vsyncpa [#allocation4], 1 }
 0x575   :  { %667 = vsyncpa [#allocation10], 1 }

</bundles_post_ra>
